<compile_context>
chip_gen: v6e
topology: v6e:2x2x1
jax: 0.10.0
libtpu: 0.0.40
codegen_flags: <defaults>
</compile_context>

<pallas_src>
import functools
import math

import jax
import jax.numpy as jnp
from jax.experimental import pallas as pl
from jax.experimental.pallas import tpu as pltpu


# ---------------------------------------------------------------------------
# Small helpers
# ---------------------------------------------------------------------------
def _round_up(a, m):
    return ((a + m - 1) // m) * m


def _sublane(itemsize):
    # native sublane packing: 8 rows for 32-bit, 16 for 16-bit, 32 for 8-bit
    return 8 * max(1, 4 // int(itemsize))


def _padded_block_bytes(rows, cols, itemsize):
    return _round_up(rows, _sublane(itemsize)) * _round_up(cols, 128) * itemsize


def _choose_tile_rows(R, bytes_per_row, itemsize, budget=24 << 20, cap=1024):
    """Largest row-tile whose (padded) double-buffered footprint fits `budget`."""
    sub = _sublane(itemsize)
    tr = budget // max(int(bytes_per_row), 1)
    tr = max(sub, (tr // sub) * sub)
    tr = min(tr, cap)
    if R <= sub:
        return int(R)                       # single block == full dim (legal)
    # Keep at least 2 grid steps so ("parallel",) can shard across v7x's 2 TCs.
    tr = min(tr, _round_up(pl.cdiv(R, 2), sub))
    return int(tr)


# ---------------------------------------------------------------------------
# Portable counter-based PRNG (lowbias32).  Pure jnp ops -> lowers on the TPU
# backend and in the CPU interpreter (pltpu.prng_* does not).
# ---------------------------------------------------------------------------
def _hash_u32(x):
    x = x ^ (x >> 16)
    x = x * jnp.uint32(0x7FEB352D)
    x = x ^ (x >> 15)
    x = x * jnp.uint32(0x846CA68B)
    x = x ^ (x >> 16)
    return x


def _dropout(y, seed, row_offset, ncols, p):
    """Inverted dropout on a (rows, cols) tile; mask from a per-element hash.

    TODO(synk): mask bits differ from torch's RNG stream; the semantics
    (drop prob p, 1/(1-p) scaling of kept values, scaling done in f32) match.
    """
    rows, cols = y.shape
    r = jax.lax.broadcasted_iota(jnp.int32, (rows, cols), 0).astype(jnp.uint32)
    c = jax.lax.broadcasted_iota(jnp.int32, (rows, cols), 1).astype(jnp.uint32)
    base = row_offset.astype(jnp.uint32)
    # Global element id (wraps mod 2^32 for >4G-element tensors; fine for a mask).
    idx = (base + r) * jnp.uint32(ncols) + c
    key = _hash_u32(seed.astype(jnp.uint32) ^ jnp.uint32(0x9E3779B9))
    bits = _hash_u32(idx ^ key)
    # Uniform in [0,1) from the top 24 bits (exact in f32); keep with prob 1-p.
    u = (bits >> 8).astype(jnp.int32).astype(jnp.float32) * jnp.float32(1.0 / (1 << 24))
    keep = u >= jnp.float32(p)
    y32 = y.astype(jnp.float32) * jnp.float32(1.0 / (1.0 - p))   # scale in f32
    return jnp.where(keep, y32, jnp.float32(0.0)).astype(y.dtype)


# ---------------------------------------------------------------------------
# Kernels
# ---------------------------------------------------------------------------
def _pe_lane_tiled_kernel(*refs, p, training, batch):
    """x block (ts, B*D) lane-dense; pe block (ts, D) compact, tiled over batch."""
    if training:
        seed_ref, x_ref, pe_ref, o_ref = refs
    else:
        x_ref, pe_ref, o_ref = refs
        seed_ref = None
    pe = pe_ref[...]
    if batch > 1:
        pe = jnp.concatenate([pe] * batch, axis=1)    # lane-axis tile (cheap XLU)
    y = x_ref[...] + pe
    if training:
        row0 = pl.program_id(0) * x_ref.shape[0]
        y = _dropout(y, seed_ref[0], row0, x_ref.shape[1], p)
    o_ref[...] = y.astype(o_ref.dtype)


def _pe_flat_kernel(*refs, p, training):
    """Flat lane-dense slab: x block and pre-broadcast pe block share a shape."""
    if training:
        seed_ref, x_ref, pe_ref, o_ref = refs
    else:
        x_ref, pe_ref, o_ref = refs
        seed_ref = None
    y = x_ref[...] + pe_ref[...]
    if training:
        row0 = pl.program_id(0) * x_ref.shape[0]
        y = _dropout(y, seed_ref[0], row0, x_ref.shape[1], p)
    o_ref[...] = y.astype(o_ref.dtype)


# ---------------------------------------------------------------------------
# Parameter setup (glue, plain JAX): sin/cos pe table exactly as __init__.
# Store it in the model dtype at init so the wrapper never re-casts per call.
# ---------------------------------------------------------------------------
def make_pe_table(max_len, d_model, dtype=jnp.float32):
    position = jnp.arange(max_len, dtype=jnp.float32)[:, None]            # (L, 1)
    div_term = jnp.exp(
        jnp.arange(0, d_model, 2, dtype=jnp.float32)
        * (-math.log(10000.0) / d_model)
    )                                                                     # (D/2,)
    angles = position * div_term                                          # (L, D/2)
    pe = jnp.zeros((max_len, d_model), jnp.float32)
    pe = pe.at[:, 0::2].set(jnp.sin(angles))
    pe = pe.at[:, 1::2].set(jnp.cos(angles))
    return pe.astype(dtype)


# ---------------------------------------------------------------------------
# Wrapper around pallas_call.
# ---------------------------------------------------------------------------
_FLAT_WIDTHS = (2048, 1024, 512, 256, 128)


def positional_encoding(x, pe_table, *, p=0.1, training=False, seed=0):
    S, B, D = x.shape
    assert pe_table.shape[0] >= S and pe_table.shape[1] == D

    p = float(p)
    use_dropout = bool(training) and p > 0.0
    if training and p >= 1.0:
        # torch Dropout(p=1.0) zeroes everything; avoid 1/(1-p) overflow.
        return jnp.zeros_like(x)

    itemsize = jnp.dtype(x.dtype).itemsize
    # Table is expected to already be in the model dtype; cast only if not.
    pe2d = pe_table if pe_table.dtype == x.dtype else pe_table.astype(x.dtype)

    if (B * D) % 128 == 0:
        # --- lane-dense view, compact pe (HBM read of pe stays S*D) ---------
        x2 = x.reshape(S, B * D)
        bytes_per_row = (4 * _round_up(B * D, 128) + 2 * _round_up(D, 128)) * itemsize
        if use_dropout:
            bytes_per_row += 2 * _round_up(B * D, 128) * 4     # mask/u32 temps
        ts = _choose_tile_rows(S, bytes_per_row, itemsize)
        grid = (pl.cdiv(S, ts),)
        kernel = functools.partial(
            _pe_lane_tiled_kernel, p=p, training=use_dropout, batch=B)
        in_specs = [
            pl.BlockSpec((ts, B * D), lambda s: (s, 0)),       # x tile
            pl.BlockSpec((ts, D), lambda s: (s, 0)),           # pe tile (compact)
        ]
        out_spec = pl.BlockSpec((ts, B * D), lambda s: (s, 0))
        operands = (x2, pe2d)                                  # full table; index_map limits DMA
        out2_shape = (S, B * D)
        blocks = [(ts, B * D), (ts, B * D), (ts, D)]
    else:
        # --- flat lane-dense slab; pe pre-broadcast over batch ---------------
        # TODO(synk): a real module would cache this broadcast table at init
        # (shape/dtype-stable) instead of rebuilding it every call.
        pe_b = jnp.broadcast_to(pe2d[:S, None, :], (S, B, D))
        N = S * B * D
        C = next((w for w in _FLAT_WIDTHS if N % w == 0), D)
        R = N // C
        x2 = x.reshape(R, C)
        pe_f = pe_b.reshape(R, C)
        bytes_per_row = 6 * _round_up(C, 128) * itemsize
        if use_dropout:
            bytes_per_row += 2 * _round_up(C, 128) * 4
        tr = _choose_tile_rows(R, bytes_per_row, itemsize)
        grid = (pl.cdiv(R, tr),)
        kernel = functools.partial(_pe_flat_kernel, p=p, training=use_dropout)
        in_specs = [
            pl.BlockSpec((tr, C), lambda r: (r, 0)),           # x tile
            pl.BlockSpec((tr, C), lambda r: (r, 0)),           # pe tile (broadcast)
        ]
        out_spec = pl.BlockSpec((tr, C), lambda r: (r, 0))
        operands = (x2, pe_f)
        out2_shape = (R, C)
        blocks = [(tr, C), (tr, C), (tr, C)]

    # vmem limit derived from the actual padded double-buffered footprint,
    # with headroom for Mosaic internals; never above v7x's 64 MiB physical.
    vmem_limit = sum(2 * _padded_block_bytes(r_, c_, itemsize) for (r_, c_) in blocks)
    if use_dropout:
        vmem_limit += 2 * _padded_block_bytes(blocks[0][0], blocks[0][1], 4)
    vmem_limit = min(max(vmem_limit + (4 << 20), 16 << 20), 64 << 20)

    if use_dropout:
        in_specs = [pl.BlockSpec(memory_space=pltpu.MemorySpace.SMEM)] + in_specs
        operands = (jnp.asarray([seed], dtype=jnp.int32),) + operands

    out2 = pl.pallas_call(
        kernel,
        out_shape=jax.ShapeDtypeStruct(out2_shape, x.dtype),
        grid=grid,
        in_specs=in_specs,
        out_specs=out_spec,
        compiler_params=pltpu.CompilerParams(
            dimension_semantics=("parallel",),                 # megacore on v7x
            vmem_limit_bytes=int(vmem_limit),
        ),
    )(*operands)
    return out2.reshape(S, B, D)


if __name__ == "__main__":
    MAX_LEN = 5000  # module default
    D = 32
    pe = make_pe_table(MAX_LEN, D)

    # --- 1) Small demo shape (seq=8, batch=2, d_model=32), eval mode --------
    S, B = 8, 2
    key = jax.random.PRNGKey(0)
    x = jax.random.normal(key, (S, B, D), dtype=jnp.float32)
    ref = x + pe[:S][:, None, :]
    out = jax.block_until_ready(positional_encoding(x, pe, p=0.1, training=False))
    assert out.shape == (S, B, D)
    assert jnp.allclose(out, ref, atol=1e-6, rtol=1e-6)

    # --- 2) Multi-tile flat path (S > tile rows, non-divisible remainder) ---
    S2 = 1040
    x2 = jax.random.normal(jax.random.PRNGKey(1), (S2, B, D), dtype=jnp.float32)
    ref2 = x2 + pe[:S2][:, None, :]
    out2 = jax.block_until_ready(positional_encoding(x2, pe, p=0.1, training=False))
    assert out2.shape == (S2, B, D)
    assert jnp.allclose(out2, ref2, atol=1e-6, rtol=1e-6)

    # --- 3) Lane-tiled path ((B*D) % 128 == 0), compact pe, multi-tile ------
    D3, S3, B3 = 128, 24, 2
    pe3 = make_pe_table(64, D3)
    x3 = jax.random.normal(jax.random.PRNGKey(2), (S3, B3, D3), dtype=jnp.float32)
    ref3 = x3 + pe3[:S3][:, None, :]
    out3 = jax.block_until_ready(positional_encoding(x3, pe3, p=0.1, training=False))
    assert jnp.allclose(out3, ref3, atol=1e-6, rtol=1e-6)

    # --- 4) Fallback path (no 128-divisible flat width) ---------------------
    D4, S4, B4 = 24, 8, 3
    pe4 = make_pe_table(64, D4)
    x4 = jax.random.normal(jax.random.PRNGKey(3), (S4, B4, D4), dtype=jnp.float32)
    ref4 = x4 + pe4[:S4][:, None, :]
    out4 = jax.block_until_ready(positional_encoding(x4, pe4, p=0.1, training=False))
    assert jnp.allclose(out4, ref4, atol=1e-6, rtol=1e-6)

    # --- 5) Training / dropout path: every element is 0 or ref/(1-p) --------
    p_train = 0.5
    out_tr = jax.block_until_ready(
        positional_encoding(x, pe, p=p_train, training=True, seed=123)
    )
    scaled = ref / (1.0 - p_train)
    ok = jnp.isclose(out_tr, 0.0, atol=1e-6) | jnp.isclose(
        out_tr, scaled, rtol=1e-5, atol=1e-6
    )
    assert bool(jnp.all(ok))
    kept_frac = float(jnp.mean((out_tr != 0.0).astype(jnp.float32)))
    assert 0.2 < kept_frac < 0.8, kept_frac   # mask is neither all-keep nor all-drop

    print("KERNEL_OK")
</pallas_src>

<mosaic_0001>
module attributes {stable_mosaic.version = 11 : i64} {
  func.func @_pe_flat_kernel(%arg0: i32, %arg1: memref<1x512xf32, #tpu.memory_space<vmem>>, %arg2: memref<1x512xf32, #tpu.memory_space<vmem>>, %arg3: memref<1x512xf32, #tpu.memory_space<vmem>>) attributes {dimension_semantics = [#tpu.dimension_semantics<parallel>], iteration_bounds = array<i64: 1>, scalar_prefetch = 0 : i64, scratch_operands = 0 : i64, tpu.core_type = #tpu.core_type<tc>, window_params = [{transform_indices = @transform_0, window_bounds = array<i64: 1, 512>}, {transform_indices = @transform_1, window_bounds = array<i64: 1, 512>}, {transform_indices = @transform_2, window_bounds = array<i64: 1, 512>}]} {
    %c0 = arith.constant 0 : index
    %c0_0 = arith.constant 0 : index
    %0 = vector.load %arg1[%c0, %c0_0] : memref<1x512xf32, #tpu.memory_space<vmem>>, vector<1x512xf32>
    %c0_1 = arith.constant 0 : index
    %c0_2 = arith.constant 0 : index
    %1 = vector.load %arg2[%c0_1, %c0_2] : memref<1x512xf32, #tpu.memory_space<vmem>>, vector<1x512xf32>
    %2 = arith.addf %0, %1 : vector<1x512xf32>
    %c0_3 = arith.constant 0 : index
    %c0_4 = arith.constant 0 : index
    %3 = vector.load %arg3[%c0_3, %c0_4] : memref<1x512xf32, #tpu.memory_space<vmem>>, vector<1x512xf32>
    tpu.vector_store %arg3[%c0_3, %c0_4], %2 {strides = array<i32>} : memref<1x512xf32, #tpu.memory_space<vmem>>, vector<1x512xf32>,
    return
  }
  func.func @transform_0(%arg0: i32) -> (i32, i32) {
    %c0_i32 = arith.constant 0 : i32
    %c0_i32_0 = arith.constant 0 : i32
    return %arg0, %c0_i32 : i32, i32
  }
  func.func @transform_1(%arg0: i32) -> (i32, i32) {
    %c0_i32 = arith.constant 0 : i32
    %c0_i32_0 = arith.constant 0 : i32
    return %arg0, %c0_i32 : i32, i32
  }
  func.func @transform_2(%arg0: i32) -> (i32, i32) {
    %c0_i32 = arith.constant 0 : i32
    %c0_i32_0 = arith.constant 0 : i32
    return %arg0, %c0_i32 : i32, i32
  }
}

</mosaic_0001>

<bundles_post_ra>
// kernel: tpu_custom_call.1
= control target key start
LH: loop header
LB: loop body
LE: loop exit
PB: predicated region body
PF: predicated region fallthrough
CT: control target
= control target key end

     0   :  { %7 = vsyncpa [#allocation3], 0  ;;  %s156_s0 = inlined_call_operand.hbm [shape: f32[1,512], index: 0, kind: input, shape index: {}]   ;;  %s157_s1 = inlined_call_operand.hbm [shape: f32[1,512], index: 1, kind: input, shape index: {}]   ;;  %s158_s2 = inlined_call_operand.hbm [shape: f32[1,512], index: 2, kind: output, shape index: {}]  }
   0x1   :  { %8 = vsyncpa [#allocation6], 0 }
   0x2   :  { %9 = vsyncpa [#allocation4], 0  ;;  %s129_s9 = smov [#allocation2]   ;;  %s130_s11 = smov [#allocation5]  }
   0x3   :  { %s16_s10 = sshll.u32 %s129_s9, 4  ;;  %s26_s12 = sshll.u32 %s130_s11, 4  ;;  %s17_s10 = int_to_ptr.vmem [resolvable:$true] %s16_s10  ;;  %s27_s12 = int_to_ptr.vmem [resolvable:$true] %s26_s12 }
   0x4   :  { %s71_s13 = scalar_lea.vmem %s17_s10, 64  ;;  %p76_p1 = scmp.lt.s32.totalorder %s17_s10, %s17_s10 }
   0x5   :  { %p72_p0 = scmp.ne.s32.totalorder %s17_s10, %s71_s13  ;;  %p77_p2 = scmp.lt.s32.totalorder %s71_s13, %s71_s13 }
   0x7   :  { %p78_p3 = por %p77_p2, %p76_p1 }
   0x9   :  { %p79_p4 = pnand %p78_p3, %p72_p0 }
   0xb   :  { %82 = shalt.err (!%p79_p4)
}
   0xc   :  { %19 = dma.hbm_to_vmem [thread:$0]  %s156_s0, 64, %s17_s10, [#allocation3]  }
   0xd   :  { %s91_s16 = scalar_lea.vmem %s27_s12, 64  ;;  %p96_p6 = scmp.lt.s32.totalorder %s27_s12, %s27_s12 }
   0xe   :  { %p92_p5 = scmp.ne.s32.totalorder %s27_s12, %s91_s16  ;;  %p97_p7 = scmp.lt.s32.totalorder %s91_s16, %s91_s16 }
  0x10   :  { %p98_p8 = por %p97_p7, %p96_p6 }
  0x12   :  { %p99_p9 = pnand %p98_p8, %p92_p5 }
  0x14   :  { %102 = shalt.err (!%p99_p9)
}
  0x15   :  { %29 = dma.hbm_to_vmem [thread:$0]  %s157_s1, 64, %s27_s12, [#allocation6]  }
  0x16   :  { %123 = dma.done.wait [#allocation3], 64  }
  0x17   :  { %124 = vsyncadd [#allocation3], 4294967232 }
  0x18   :  { %125 = dma.done.wait [#allocation6], 64  }
  0x19   :  { %126 = vsyncadd [#allocation6], 4294967232  ;;  %v39_v0 = vlaneseq  ;;  %s131_s19 = smov [#allocation7]   ;;  %v36_v1 = vld [vmem:[#allocation2] sm:$0xf] }
  0x1a   :  { %s50_s20 = sshll.u32 %s131_s19, 4  ;;  %v37_v2 = vld [vmem:[#allocation5] sm:$0xf]  ;;  %s51_s20 = int_to_ptr.vmem [resolvable:$true] %s50_s20 }
  0x1b   :  { %vm41_vm0 = vcmp.lt.s32.totalorder %v39_v0, 512  ;;  %v38_v3 = vadd.f32 %v37_v2, %v36_v1  ;;  %s103_s0 = scalar_lea.vmem %s51_s20, 64  ;;  %p108_p11 = scmp.lt.s32.totalorder %s51_s20, %s51_s20 }
  0x1c   :  { %p104_p10 = scmp.ne.s32.totalorder %s51_s20, %s103_s0  ;;  %p109_p12 = scmp.lt.s32.totalorder %s103_s0, %s103_s0 }
  0x1d   :  { %43 = vst.msk [vmem:[#allocation7] sm:$0xf] %vm41_vm0, %v38_v3 }
  0x1e   :  { %p110_p13 = por %p109_p12, %p108_p11 }
  0x20   :  { %p111_p0 = pnand %p110_p13, %p104_p10 }
  0x22   :  { %114 = shalt.err (!%p111_p0)
}
  0x23   :  { %53 = dma.vmem_to_hbm [thread:$0]  %s51_s20, 64, %s158_s2, [#allocation4]  }
  0x24   :  { %127 = dma.done.wait [#allocation4], 64  }
  0x25   :  { %128 = vsyncadd [#allocation4], 4294967232 }
  0x26   :  { %57 = vsyncpa [#allocation3], 1 }
  0x27   :  { %58 = vsyncpa [#allocation6], 1 }
  0x28   :  { %59 = vsyncpa [#allocation4], 1 }

</bundles_post_ra>
